<compile_context>
chip_gen: v7x
topology: tpu7x:2x2x1
jax: 0.10.0
libtpu: 0.0.40
codegen_flags: <defaults>
</compile_context>

<pallas_src>
import functools

import numpy as np
import jax
import jax.numpy as jnp
from jax import lax
from jax.experimental import pallas as pl
from jax.experimental.pallas import tpu as pltpu


def _lowpass_1d(v, dim, seg, valid=None):
    """Composed (avg_pool k=2,s=2 -> bilinear x2, align_corners=False) along
    axis `dim` of a 2-D array `v`, applied independently inside consecutive
    segments of length `seg` (seg even, seg divides v.shape[dim]).  Only the
    first `valid` positions of each segment are meaningful (valid <= seg,
    valid even); positions past `valid` may contain garbage (lane padding).

      p[k]      = 0.5 * (v[2k] + v[2k+1])
      low[2k]   = 0.25*p[k-1] + 0.75*p[k]      (p clamped at segment edges)
      low[2k+1] = 0.75*p[k]   + 0.25*p[k+1]

    Cyclic pltpu.roll is used for all shifts; every wrapped / cross-segment /
    padded element lands on a position the edge-clamp select overwrites (or on
    a padded position that is discarded), so the result is exact.
    """
    L = v.shape[dim]
    if valid is None:
        valid = seg

    # Rank-reduced index vector: varies only along `dim`, broadcasts in where.
    ishape = tuple(L if d == dim else 1 for d in range(v.ndim))
    j = lax.broadcasted_iota(jnp.int32, ishape, dim)
    if seg != L:
        j = j % seg                       # segment-local index (H pass only)
    even = (j & 1) == 0

    nxt = pltpu.roll(v, L - 1, dim)       # v[.+1] (cyclic; only read at even j)
    prv = pltpu.roll(v, 1, dim)           # v[.-1] (cyclic; only read at odd j)
    s = v + jnp.where(even, nxt, prv)     # s[j] = v[2k] + v[2k+1] = 2*p[k]

    s_m2 = jnp.where(j < 2, s, pltpu.roll(s, 2, dim))              # s[j-2], clamped
    s_p2 = jnp.where(j >= valid - 2, s, pltpu.roll(s, L - 2, dim))  # s[j+2], clamped
    return 0.375 * s + 0.125 * jnp.where(even, s_m2, s_p2)


def _wavelet_kernel(x_ref, low_ref, high_ref, *, seg_h, valid_w):
    x = x_ref[...].astype(jnp.float32)                         # (Bc*H, Wp)
    low = _lowpass_1d(x, dim=1, seg=x.shape[1], valid=valid_w)  # W (lane axis)
    low = _lowpass_1d(low, dim=0, seg=seg_h)                    # H (sublanes, per channel)
    low_ref[...] = low.astype(low_ref.dtype)
    # residual in f32 before any downcast (cancellation-sensitive subtraction)
    high_ref[...] = (x - low).astype(high_ref.dtype)


def _device_budget():
    """Returns (vmem_limit_bytes, max_block_bytes) based on physical VMEM."""
    vmem_bytes = None
    try:
        vmem_bytes = pltpu.get_tpu_info().vmem_capacity_bytes
    except Exception:
        pass
    if vmem_bytes is None:
        try:
            kind = jax.devices()[0].device_kind.lower()
            if ("v5" in kind) or ("v6" in kind):
                vmem_bytes = 128 * 1024 * 1024
            else:
                vmem_bytes = 64 * 1024 * 1024        # conservative (v7x-sized)
        except Exception:
            vmem_bytes = 64 * 1024 * 1024
    if vmem_bytes >= 128 * 1024 * 1024:
        # v5e / v6e: big double-buffered blocks amortize the ~0.35us/step grid
        # overhead and keep DMAs large.  Explicit limit (v5e scoped default is
        # only 16 MiB).
        return 96 * 1024 * 1024, 6 * 1024 * 1024
    # v7x: 64 MiB physical VMEM -- size blocks with the f32 body temporaries
    # and 3x2 pipeline buffers counted.
    return 48 * 1024 * 1024, 3 * 1024 * 1024


def _pick_block_channels(nc, h, slice_bytes, target_bytes, sublane):
    """Largest Bc (not necessarily a divisor of nc) such that the (Bc*H, Wp)
    block fits the byte target, Bc*H is a multiple of the dtype's sublane tile
    (or spans the whole array), and the grid cdiv(nc, Bc) keeps >= 8 steps
    (>= 4 per v7x TensorCore) for pipeline overlap."""
    min_grid = min(8, nc)
    best = None
    for bc in range(1, nc + 1):
        rows_ok = ((bc * h) % sublane == 0) or (bc == nc)
        grid_ok = pl.cdiv(nc, bc) >= min_grid
        fits = bc * slice_bytes <= target_bytes
        if rows_ok and grid_ok and fits:
            best = bc
    if best is None:
        # Fall back: smallest sublane-legal block (may exceed the byte target;
        # see the footprint check + TODO in the wrapper for huge planes).
        for bc in range(1, nc + 1):
            if ((bc * h) % sublane == 0) or bc == nc:
                best = bc
                break
    return best


def wavelet_decomposition(x, *, block_bytes_target=None, vmem_limit_bytes=None):
    """x: (N, C, H, W). Returns (low_freq, high_freq), both NCHW, dtype of x."""
    N, C, H, W = x.shape
    if H % 2 or W % 2:
        raise ValueError("H and W must be even for avg_pool2d(k=2, s=2).")

    itemsize = x.dtype.itemsize
    sublane = {4: 8, 2: 16, 1: 32}.get(itemsize, 8)

    auto_limit, auto_block = _device_budget()
    if vmem_limit_bytes is None:
        vmem_limit_bytes = auto_limit
    # Per-block VMEM footprint factor: 3 arrays x 2 pipeline buffers (input
    # dtype) + ~6 live block-shaped f32 temporaries in the kernel body.
    factor = 6 + (6 * 4) // itemsize
    if block_bytes_target is None:
        block_bytes_target = min(auto_block, (vmem_limit_bytes * 3 // 4) // factor)

    nc = N * C
    x2d = x.reshape(nc * H, W)            # free, contiguous reshape

    # Lane-dense stores: pad W up to a multiple of 128 when W >= 128.
    # TODO(synk): for W < 128, pack multiple image rows into the lane axis.
    if W >= 128 and W % 128 != 0:
        Wp = ((W + 127) // 128) * 128
        x2d = jnp.pad(x2d, ((0, 0), (0, Wp - W)))
    else:
        Wp = W

    slice_bytes = H * Wp * itemsize
    bc = _pick_block_channels(nc, H, slice_bytes, block_bytes_target, sublane)
    rows = bc * H
    grid = (pl.cdiv(nc, bc),)             # tail block is masked by Pallas

    # Sanity check against the VMEM budget (only trips for pathological shapes,
    # e.g. a single enormous channel plane).
    # TODO(synk): tile along W with a 2-column halo for very large planes.
    approx_vmem = factor * rows * Wp * itemsize
    if approx_vmem > vmem_limit_bytes:
        raise ValueError(
            "WaveletDecomposition block does not fit the VMEM budget "
            f"(~{approx_vmem >> 20} MiB needed, limit {vmem_limit_bytes >> 20} MiB); "
            "the single channel plane is too large and needs W-tiling with a "
            "2-column halo.")

    kernel = functools.partial(_wavelet_kernel, seg_h=H, valid_w=W)

    low2d, high2d = pl.pallas_call(
        kernel,
        out_shape=(
            jax.ShapeDtypeStruct((nc * H, Wp), x.dtype),
            jax.ShapeDtypeStruct((nc * H, Wp), x.dtype),
        ),
        grid_spec=pltpu.PrefetchScalarGridSpec(
            num_scalar_prefetch=0,
            grid=grid,
            in_specs=[pl.BlockSpec((rows, Wp), lambda i: (i, 0))],
            out_specs=[
                pl.BlockSpec((rows, Wp), lambda i: (i, 0)),
                pl.BlockSpec((rows, Wp), lambda i: (i, 0)),
            ],
        ),
        compiler_params=pltpu.CompilerParams(
            dimension_semantics=("parallel",),
            vmem_limit_bytes=vmem_limit_bytes,
        ),
    )(x2d)

    if Wp != W:
        low2d = low2d[:, :W]
        high2d = high2d[:, :W]
    return low2d.reshape(N, C, H, W), high2d.reshape(N, C, H, W)


def _reference(x: np.ndarray):
    """Pure-numpy reference mirroring PyTorch avg_pool2d + bilinear x2."""
    N, C, H, W = x.shape
    p = x.astype(np.float32).reshape(N, C, H // 2, 2, W // 2, 2).mean(axis=(3, 5))

    def up1d(a, axis):
        a = np.moveaxis(a, axis, -1)
        prev = np.concatenate([a[..., :1], a[..., :-1]], axis=-1)
        nxt = np.concatenate([a[..., 1:], a[..., -1:]], axis=-1)
        even = 0.25 * prev + 0.75 * a
        odd = 0.75 * a + 0.25 * nxt
        out = np.stack([even, odd], axis=-1).reshape(
            *a.shape[:-1], 2 * a.shape[-1])
        return np.moveaxis(out, -1, axis)

    low = up1d(up1d(p, 2), 3)
    return low.astype(x.dtype), (x.astype(np.float32) - low).astype(x.dtype)


if __name__ == "__main__":
    key = jax.random.PRNGKey(0)

    # Primary check: small NCHW input matching the module's expected use.
    N, C, H, W = 2, 4, 16, 16
    x = jax.random.normal(key, (N, C, H, W), dtype=jnp.float32)
    low, high = wavelet_decomposition(x)
    jax.block_until_ready((low, high))

    low_ref, high_ref = _reference(np.asarray(x))
    np.testing.assert_allclose(np.asarray(low), low_ref, rtol=1e-5, atol=1e-5)
    np.testing.assert_allclose(np.asarray(high), high_ref, rtol=1e-5, atol=1e-5)
    np.testing.assert_allclose(np.asarray(low) + np.asarray(high),
                               np.asarray(x), rtol=1e-5, atol=1e-5)

    # Non-divisor channel count -> masked tail block (forced small block target).
    x2 = jax.random.normal(jax.random.PRNGKey(1), (1, 17, 8, 16), jnp.float32)
    low2, high2 = wavelet_decomposition(x2, block_bytes_target=2048)
    jax.block_until_ready((low2, high2))
    l2r, h2r = _reference(np.asarray(x2))
    np.testing.assert_allclose(np.asarray(low2), l2r, rtol=1e-5, atol=1e-5)
    np.testing.assert_allclose(np.asarray(high2), h2r, rtol=1e-5, atol=1e-5)

    # W >= 128 and not a multiple of 128 -> lane padding + valid-width clamp.
    x3 = jax.random.normal(jax.random.PRNGKey(2), (1, 2, 8, 160), jnp.float32)
    low3, high3 = wavelet_decomposition(x3)
    jax.block_until_ready((low3, high3))
    l3r, h3r = _reference(np.asarray(x3))
    np.testing.assert_allclose(np.asarray(low3), l3r, rtol=1e-5, atol=1e-5)
    np.testing.assert_allclose(np.asarray(high3), h3r, rtol=1e-5, atol=1e-5)

    print("KERNEL_OK")
</pallas_src>

<mosaic_0001>
module attributes {stable_mosaic.version = 11 : i64} {
  func.func @_wavelet_kernel(%arg0: i32, %arg1: memref<16x16xf32, #tpu.memory_space<vmem>>, %arg2: memref<16x16xf32, #tpu.memory_space<vmem>>, %arg3: memref<16x16xf32, #tpu.memory_space<vmem>>) attributes {dimension_semantics = [#tpu.dimension_semantics<parallel>], iteration_bounds = array<i64: 8>, scalar_prefetch = 0 : i64, scratch_operands = 0 : i64, tpu.core_type = #tpu.core_type<tc>, window_params = [{transform_indices = @transform_0, window_bounds = array<i64: 16, 16>}, {transform_indices = @transform_1, window_bounds = array<i64: 16, 16>}, {transform_indices = @transform_2, window_bounds = array<i64: 16, 16>}]} {
    %c0 = arith.constant 0 : index
    %c0_0 = arith.constant 0 : index
    %0 = vector.load %arg1[%c0, %c0_0] : memref<16x16xf32, #tpu.memory_space<vmem>>, vector<16x16xf32>
    %1 = tpu.iota {dimensions = array<i32: 1>} : vector<1x16xi32>
    %c1_i32 = arith.constant 1 : i32
    %2 = vector.broadcast %c1_i32 : i32 to vector<1x16xi32>
    %3 = arith.andi %1, %2 : vector<1x16xi32>
    %c0_i32 = arith.constant 0 : i32
    %4 = vector.broadcast %c0_i32 : i32 to vector<1x16xi32>
    %5 = arith.cmpi eq, %3, %4 : vector<1x16xi32>
    %c15_i32 = arith.constant 15 : i32
    %6 = tpu.dynamic_rotate %0 by %c15_i32 dim 1 : vector<16x16xf32>, i32 -> vector<16x16xf32>
    %c1_i32_1 = arith.constant 1 : i32
    %7 = tpu.dynamic_rotate %0 by %c1_i32_1 dim 1 : vector<16x16xf32>, i32 -> vector<16x16xf32>
    %8 = vector.shape_cast %5 : vector<1x16xi1> to vector<1x16xi1>
    %9 = vector.broadcast %8 : vector<1x16xi1> to vector<16x16xi1>
    %10 = arith.select %9, %6, %7 : vector<16x16xi1>, vector<16x16xf32>
    %11 = arith.addf %0, %10 : vector<16x16xf32>
    %c2_i32 = arith.constant 2 : i32
    %12 = vector.broadcast %c2_i32 : i32 to vector<1x16xi32>
    %13 = arith.cmpi slt, %1, %12 : vector<1x16xi32>
    %c2_i32_2 = arith.constant 2 : i32
    %14 = tpu.dynamic_rotate %11 by %c2_i32_2 dim 1 : vector<16x16xf32>, i32 -> vector<16x16xf32>
    %15 = vector.shape_cast %13 : vector<1x16xi1> to vector<1x16xi1>
    %16 = vector.broadcast %15 : vector<1x16xi1> to vector<16x16xi1>
    %17 = arith.select %16, %11, %14 : vector<16x16xi1>, vector<16x16xf32>
    %c14_i32 = arith.constant 14 : i32
    %18 = vector.broadcast %c14_i32 : i32 to vector<1x16xi32>
    %19 = arith.cmpi sge, %1, %18 : vector<1x16xi32>
    %c14_i32_3 = arith.constant 14 : i32
    %20 = tpu.dynamic_rotate %11 by %c14_i32_3 dim 1 : vector<16x16xf32>, i32 -> vector<16x16xf32>
    %21 = vector.shape_cast %19 : vector<1x16xi1> to vector<1x16xi1>
    %22 = vector.broadcast %21 : vector<1x16xi1> to vector<16x16xi1>
    %23 = arith.select %22, %11, %20 : vector<16x16xi1>, vector<16x16xf32>
    %cst = arith.constant 3.750000e-01 : f32
    %24 = vector.broadcast %cst : f32 to vector<16x16xf32>
    %25 = arith.mulf %24, %11 : vector<16x16xf32>
    %26 = vector.shape_cast %5 : vector<1x16xi1> to vector<1x16xi1>
    %27 = vector.broadcast %26 : vector<1x16xi1> to vector<16x16xi1>
    %28 = arith.select %27, %17, %23 : vector<16x16xi1>, vector<16x16xf32>
    %cst_4 = arith.constant 1.250000e-01 : f32
    %29 = vector.broadcast %cst_4 : f32 to vector<16x16xf32>
    %30 = arith.mulf %29, %28 : vector<16x16xf32>
    %31 = arith.addf %25, %30 : vector<16x16xf32>
    %32 = tpu.iota {dimensions = array<i32: 0>} : vector<16x1xi32>
    %c1_i32_5 = arith.constant 1 : i32
    %33 = vector.broadcast %c1_i32_5 : i32 to vector<16x1xi32>
    %34 = arith.andi %32, %33 : vector<16x1xi32>
    %c0_i32_6 = arith.constant 0 : i32
    %35 = vector.broadcast %c0_i32_6 : i32 to vector<16x1xi32>
    %36 = arith.cmpi eq, %34, %35 : vector<16x1xi32>
    %c15_i32_7 = arith.constant 15 : i32
    %37 = tpu.dynamic_rotate %31 by %c15_i32_7 dim 0 : vector<16x16xf32>, i32 -> vector<16x16xf32>
    %c1_i32_8 = arith.constant 1 : i32
    %38 = tpu.dynamic_rotate %31 by %c1_i32_8 dim 0 : vector<16x16xf32>, i32 -> vector<16x16xf32>
    %39 = vector.shape_cast %36 : vector<16x1xi1> to vector<16x1xi1>
    %40 = vector.broadcast %39 : vector<16x1xi1> to vector<16x16xi1>
    %41 = arith.select %40, %37, %38 : vector<16x16xi1>, vector<16x16xf32>
    %42 = arith.addf %31, %41 : vector<16x16xf32>
    %c2_i32_9 = arith.constant 2 : i32
    %43 = vector.broadcast %c2_i32_9 : i32 to vector<16x1xi32>
    %44 = arith.cmpi slt, %32, %43 : vector<16x1xi32>
    %c2_i32_10 = arith.constant 2 : i32
    %45 = tpu.dynamic_rotate %42 by %c2_i32_10 dim 0 : vector<16x16xf32>, i32 -> vector<16x16xf32>
    %46 = vector.shape_cast %44 : vector<16x1xi1> to vector<16x1xi1>
    %47 = vector.broadcast %46 : vector<16x1xi1> to vector<16x16xi1>
    %48 = arith.select %47, %42, %45 : vector<16x16xi1>, vector<16x16xf32>
    %c14_i32_11 = arith.constant 14 : i32
    %49 = vector.broadcast %c14_i32_11 : i32 to vector<16x1xi32>
    %50 = arith.cmpi sge, %32, %49 : vector<16x1xi32>
    %c14_i32_12 = arith.constant 14 : i32
    %51 = tpu.dynamic_rotate %42 by %c14_i32_12 dim 0 : vector<16x16xf32>, i32 -> vector<16x16xf32>
    %52 = vector.shape_cast %50 : vector<16x1xi1> to vector<16x1xi1>
    %53 = vector.broadcast %52 : vector<16x1xi1> to vector<16x16xi1>
    %54 = arith.select %53, %42, %51 : vector<16x16xi1>, vector<16x16xf32>
    %cst_13 = arith.constant 3.750000e-01 : f32
    %55 = vector.broadcast %cst_13 : f32 to vector<16x16xf32>
    %56 = arith.mulf %55, %42 : vector<16x16xf32>
    %57 = vector.shape_cast %36 : vector<16x1xi1> to vector<16x1xi1>
    %58 = vector.broadcast %57 : vector<16x1xi1> to vector<16x16xi1>
    %59 = arith.select %58, %48, %54 : vector<16x16xi1>, vector<16x16xf32>
    %cst_14 = arith.constant 1.250000e-01 : f32
    %60 = vector.broadcast %cst_14 : f32 to vector<16x16xf32>
    %61 = arith.mulf %60, %59 : vector<16x16xf32>
    %62 = arith.addf %56, %61 : vector<16x16xf32>
    %c0_15 = arith.constant 0 : index
    %c0_16 = arith.constant 0 : index
    %63 = vector.load %arg2[%c0_15, %c0_16] : memref<16x16xf32, #tpu.memory_space<vmem>>, vector<16x16xf32>
    tpu.vector_store %arg2[%c0_15, %c0_16], %62 {strides = array<i32>} : memref<16x16xf32, #tpu.memory_space<vmem>>, vector<16x16xf32>,
    %64 = arith.subf %0, %62 : vector<16x16xf32>
    %c0_17 = arith.constant 0 : index
    %c0_18 = arith.constant 0 : index
    %65 = vector.load %arg3[%c0_17, %c0_18] : memref<16x16xf32, #tpu.memory_space<vmem>>, vector<16x16xf32>
    tpu.vector_store %arg3[%c0_17, %c0_18], %64 {strides = array<i32>} : memref<16x16xf32, #tpu.memory_space<vmem>>, vector<16x16xf32>,
    return
  }
  func.func @transform_0(%arg0: i32) -> (i32, i32) {
    %c0_i32 = arith.constant 0 : i32
    %c0_i32_0 = arith.constant 0 : i32
    return %arg0, %c0_i32 : i32, i32
  }
  func.func @transform_1(%arg0: i32) -> (i32, i32) {
    %c0_i32 = arith.constant 0 : i32
    %c0_i32_0 = arith.constant 0 : i32
    return %arg0, %c0_i32 : i32, i32
  }
  func.func @transform_2(%arg0: i32) -> (i32, i32) {
    %c0_i32 = arith.constant 0 : i32
    %c0_i32_0 = arith.constant 0 : i32
    return %arg0, %c0_i32 : i32, i32
  }
}

</mosaic_0001>

<bundles_post_ra>
// kernel: tpu_custom_call.1
= control target key start
LH: loop header
LB: loop body
LE: loop exit
PB: predicated region body
PF: predicated region fallthrough
CT: control target
= control target key end

     0   :  { %s453_s9 = smov 0   ;;  %s536_s0 = inlined_call_operand.vmem [shape: f32[128,16], index: 0, kind: input, shape index: {}]   ;;  %s537_s1 = inlined_call_operand.vmem [shape: f32[128,16], index: 1, kind: output, shape index: {0}]   ;;  %s538_s2 = inlined_call_operand.vmem [shape: f32[128,16], index: 2, kind: output, shape index: {1}]  }
   0x1 LB: > { %s399_s10 = sadd.s32 4294967295, %s431_s9   ;;  %p403_p0 = scmp.ge.s32.totalorder %s431_s9, 1  ;;  %s431_s9 = sphi %s453_s9, %s13_s9  }
   0x2   : > { %p116_p1 = scmp.lt.s32.totalorder %s431_s9, 9 }
   0x4   : > { %p117_p2 = pnand %p403_p0, %p116_p1 }
   0x5   : > { %s404_s11 = sshll.u32 (!%p117_p2), %s399_s10, 1  ;;  %s433_s16 = smov (!%p117_p2), 16   ;;  %vm167_vm0 = vcmask (!%p117_p2), 1047680   ;;  %v163_v10 = vlaneseq (!%p117_p2)  ;;  %vm302_vm11 = vcmask (!%p117_p2), 130048  }
   0x6   : > { %120 = sbr.rel (%p117_p2) target bundleno = 750 (0x2ee), region = 24  ;;  %p144_p3 = scmp.lt.s32.totalorder (!%p117_p2), %s404_s11, 15 }
   0x7   : > { %s434_s17 = smov (!%p117_p2), 127   ;;  %s435_s18 = smov (!%p117_p2), 113   ;;  %v164_v11 = vand.u32 (!%p117_p2), 127, %v163_v10  ;;  %v245_v31 = vshrl.u32 (!%p117_p2), %v163_v10, 7 }
   0x8   : > { %s436_s19 = smov (!%p117_p2), 114   ;;  %s437_s20 = smov (!%p117_p2), 126  }
   0x9   : > { %v165_v12 = vand.u32 (!%p117_p2), 1, %v164_v11  ;;  %vm200_vm2 = vcmp.lt.s32.totalorder (!%p117_p2), %v164_v11, 2  ;;  %vm225_vm3 = vcmp.ge.s32.totalorder (!%p117_p2), %v164_v11, 14  ;;  %v246_v37 = vadd.s32 (!%p117_p2), 8, %v245_v31 }
   0xa   : > { %v247_v43 = vand.u32 (!%p117_p2), 1, %v245_v31  ;;  %vm253_vm6 = vcmp.lt.s32.totalorder (!%p117_p2), %v245_v31, 7  ;;  %vm258_vm7 = vcmp.lt.s32.totalorder (!%p117_p2), %v245_v31, 1  ;;  %vm269_vm8 = vcmp.lt.s32.totalorder (!%p117_p2), %v245_v31, 2 }
   0xb   : > { %vm485_vm1 = vcmp.eq.s32.totalorder (!%p117_p2), %v165_v12, 0  ;;  %v248_v44 = vand.u32 (!%p117_p2), 1, %v246_v37  ;;  %vm282_vm9 = vcmp.ge.s32.totalorder (!%p117_p2), %v246_v37, 14  ;;  %vm285_vm10 = vcmp.lt.s32.totalorder (!%p117_p2), %v245_v31, 6 }
   0xc   : > { %vm507_vm4 = vcmp.eq.s32.totalorder (!%p117_p2), %v247_v43, 0 }
   0xd   : > { %s546_s11 = smov (!%p144_p3, %s404_s11), 15  ;;  %vm511_vm5 = vcmp.eq.s32.totalorder %v248_v44, 0 }
   0xe   : > { %s461_s12 = sshll.u32 %s546_s11, 3 }
   0xf   : > { %s147_s15 = scalar_lea.vmem %s536_s0, %s461_s12  ;;  %s153_s23 = scalar_lea.vmem %s537_s1, %s461_s12 }
  0x10   : > { %v467_v0 = vld [vmem:[%s147_s15] sm:$0xff]  ;;  %v471_v1 = vld [vmem:[%s147_s15 + $0x8] sm:$0xff]  ;;  %s159_s26 = scalar_lea.vmem %s538_s2, %s461_s12 }
  0x11   : > { %168 = vrot.lane.b32.xlu0 %v467_v0, %s433_s16 }
  0x15   : > { %171 = vrot.lane.b32.xlu0 %v471_v1, %s433_s16 }
  0x83   : > { %v169_v2 = vpop.permute.xlu0 %168 }
  0x84   : > { %v170_v3 = vsel %vm167_vm0, %v169_v2, %v467_v0 }
  0x85   : > { %174 = vrot.lane.b32.xlu1 %v170_v3, %s433_s16 }
  0x87   : > { %v172_v4 = vpop.permute.xlu0 %171 }
  0x88   : > { %v173_v5 = vsel %vm167_vm0, %v172_v4, %v471_v1 }
  0x89   : > { %176 = vrot.lane.b32.xlu1 %v173_v5, %s433_s16 }
  0xf7   : > { %v175_v6 = vpop.permute.xlu1 %174 }
  0xf8   : > { %v178_v7 = vsel %vm167_vm0, %v175_v6, %v467_v0 }
  0xf9   : > { %184 = vrot.lane.b32.xlu0 %v178_v7, %s434_s17 }
  0xfb   : > { %v177_v8 = vpop.permute.xlu1 %176 }
  0xfc   : > { %v179_v9 = vsel %vm167_vm0, %v177_v8, %v471_v1 }
  0xfd   : > { %190 = vrot.lane.b32.xlu0 %v178_v7, %s435_s18  ;;  %186 = vrot.lane.b32.xlu1 %v179_v9, %s434_s17 }
 0x101   : > { %192 = vrot.lane.b32.xlu1 %v179_v9, %s435_s18 }
 0x16b   : > { %v185_v13 = vpop.permute.xlu0 %184 }
 0x16f   : > { %v187_v15 = vpop.permute.xlu1 %186  ;;  %v191_v16 = vpop.permute.xlu0 %190 }
 0x170   : > { %v196_v17 = vsel %vm485_vm1, %v185_v13, %v191_v16 }
 0x171   : > { %v198_v18 = vadd.f32 %v196_v17, %v467_v0 }
 0x173   : > { %v193_v19 = vpop.permute.xlu1 %192  ;;  %201 = vrot.lane.b32.xlu0 %v198_v18, %s433_s16  ;;  %v236_v41 = vmul.f32 0.375, %v198_v18 }
 0x174   : > { %v197_v20 = vsel %vm485_vm1, %v187_v15, %v193_v19 }
 0x175   : > { %v199_v21 = vadd.f32 %v197_v20, %v471_v1 }
 0x177   : > { %204 = vrot.lane.b32.xlu1 %v199_v21, %s433_s16  ;;  %v237_v47 = vmul.f32 0.375, %v199_v21 }
 0x1e5   : > { %v202_v22 = vpop.permute.xlu0 %201 }
 0x1e6   : > { %v203_v23 = vsel %vm167_vm0, %v202_v22, %v198_v18 }
 0x1e7   : > { %207 = vrot.lane.b32.xlu0 %v203_v23, %s433_s16 }
 0x1e9   : > { %v205_v24 = vpop.permute.xlu1 %204 }
 0x1ea   : > { %v206_v25 = vsel %vm167_vm0, %v205_v24, %v199_v21 }
 0x1eb   : > { %209 = vrot.lane.b32.xlu1 %v206_v25, %s433_s16 }
 0x259   : > { %v208_v26 = vpop.permute.xlu0 %207 }
 0x25a   : > { %v211_v27 = vsel %vm167_vm0, %v208_v26, %v198_v18 }
 0x25b   : > { %217 = vrot.lane.b32.xlu0 %v211_v27, %s436_s19 }
 0x25d   : > { %v210_v28 = vpop.permute.xlu1 %209 }
 0x25e   : > { %v212_v29 = vsel %vm167_vm0, %v210_v28, %v199_v21 }
 0x25f   : > { %219 = vrot.lane.b32.xlu1 %v212_v29, %s436_s19  ;;  %228 = vrot.lane.b32.xlu0 %v211_v27, %s437_s20 }
 0x263   : > { %230 = vrot.lane.b32.xlu1 %v212_v29, %s437_s20 }
 0x2cd   : > { %v218_v30 = vpop.permute.xlu0 %217 }
 0x2ce   : > { %v223_v34 = vsel %vm200_vm2, %v198_v18, %v218_v30 }
 0x2d1   : > { %v220_v32 = vpop.permute.xlu1 %219  ;;  %v229_v33 = vpop.permute.xlu0 %228 }
 0x2d2   : > { %v234_v35 = vsel %vm225_vm3, %v198_v18, %v229_v33  ;;  %v224_v40 = vsel %vm200_vm2, %v199_v21, %v220_v32 }
 0x2d3   : > { %v238_v36 = vsel %vm485_vm1, %v223_v34, %v234_v35 }
 0x2d4   : > { %v240_v38 = vmul.f32 0.125, %v238_v36 }
 0x2d5   : > { %v231_v39 = vpop.permute.xlu1 %230 }
 0x2d6   : > { %v235_v42 = vsel %vm225_vm3, %v199_v21, %v231_v39  ;;  %v242_v46 = vadd.f32 %v240_v38, %v236_v41 }
 0x2d7   : > { %v239_v45 = vsel %vm485_vm1, %v224_v40, %v235_v42 }
 0x2d8   : > { %v241_v48 = vmul.f32 0.125, %v239_v45  ;;  %v251_v52 = vrot.slane %v242_v46, 1  ;;  %v256_v53 = vrot.slane %v242_v46, 7 }
 0x2da   : > { %v243_v49 = vadd.f32 %v241_v48, %v237_v47 }
 0x2dc   : > { %v252_v54 = vrot.slane %v243_v49, 1  ;;  %v257_v55 = vrot.slane %v243_v49, 7 }
 0x2de   : > { %v254_v56 = vsel %vm253_vm6, %v251_v52, %v252_v54  ;;  %v255_v57 = vsel %vm253_vm6, %v252_v54, %v251_v52  ;;  %v259_v58 = vsel %vm258_vm7, %v256_v53, %v257_v55  ;;  %v260_v59 = vsel %vm258_vm7, %v257_v55, %v256_v53 }
 0x2df   : > { %v265_v60 = vsel %vm507_vm4, %v254_v56, %v260_v59  ;;  %v266_v61 = vsel %vm511_vm5, %v255_v57, %v259_v58 }
 0x2e0   : > { %v267_v62 = vadd.f32 %v265_v60, %v242_v46  ;;  %v268_v63 = vadd.f32 %v266_v61, %v243_v49 }
 0x2e2   : > { %v271_v2 = vrot.slane %v267_v62, 6  ;;  %v272_v3 = vrot.slane %v268_v63, 6  ;;  %v283_v4 = vrot.slane %v267_v62, 2  ;;  %v284_v5 = vrot.slane %v268_v63, 2 }
 0x2e3   : > { %v294_v14 = vmul.f32 0.375, %v267_v62  ;;  %v295_v15 = vmul.f32 0.375, %v268_v63 }
 0x2e4   : > { %v273_v6 = vsel %vm269_vm8, %v271_v2, %v272_v3  ;;  %v274_v7 = vsel %vm269_vm8, %v272_v3, %v271_v2  ;;  %v286_v8 = vsel %vm285_vm10, %v283_v4, %v284_v5  ;;  %v287_v9 = vsel %vm285_vm10, %v284_v5, %v283_v4 }
 0x2e5   : > { %v279_v10 = vsel %vm269_vm8, %v267_v62, %v274_v7  ;;  %v293_v11 = vsel %vm282_vm9, %v268_v63, %v287_v9 }
 0x2e6   : > { %v296_v12 = vsel %vm507_vm4, %v279_v10, %v286_v8  ;;  %v297_v13 = vsel %vm511_vm5, %v273_v6, %v293_v11 }
 0x2e7   : > { %v298_v16 = vmul.f32 0.125, %v296_v12  ;;  %v299_v17 = vmul.f32 0.125, %v297_v13 }
 0x2e9   : > { %v300_v18 = vadd.f32 %v298_v16, %v294_v14  ;;  %v301_v19 = vadd.f32 %v299_v17, %v295_v15 }
 0x2eb   : > { %303 = vst.msk [vmem:[%s153_s23] sm:$0xff] %vm302_vm11, %v300_v18  ;;  %304 = vst.msk [vmem:[%s153_s23 + $0x8] sm:$0xff] %vm302_vm11, %v301_v19  ;;  %v305_v20 = vsub.f32 %v467_v0, %v300_v18  ;;  %v306_v21 = vsub.f32 %v471_v1, %v301_v19 }
 0x2ed   : > { %307 = vst.msk [vmem:[%s159_s26] sm:$0xff] %vm302_vm11, %v305_v20  ;;  %308 = vst.msk [vmem:[%s159_s26 + $0x8] sm:$0xff] %vm302_vm11, %v306_v21 }
 0x2ee PF: > { %s13_s9 = sadd.s32 1, %s431_s9  }
 0x2ef   : > { %p10_p4 = scmp.ge.s32.totalorder %s13_s9, 10  }
 0x2f1   :  { %12 = sbr.rel (!%p10_p4) target bundleno = 1 (0x1), region = 66 }

</bundles_post_ra>
